<compile_context>
chip_gen: v7x
topology: tpu7x:2x2x1
jax: 0.10.0
libtpu: 0.0.40
codegen_flags: <defaults>
</compile_context>

<pallas_src>
import functools

import jax
import jax.numpy as jnp
from jax import lax
from jax.experimental import pallas as pl
from jax.experimental.pallas import tpu as pltpu


# --------------------------------------------------------------------------- #
# Kernel
# --------------------------------------------------------------------------- #
def _conv_bn_relu(x, wb_ref, b_ref, m_dn, m_up, *, BH, Lco):
    """One (conv3x3 => folded-BN bias => ReLU) layer in fused (B*H, W*C) layout.

    x      : (BH, W*Ci)       activation in the matmul dtype (no f32 upcast)
    wb_ref : (W*Ci, 3*W*Co)   fused per-dy band weights (BN scale folded in)
    b_ref  : (1, W*Co)        f32 folded BN bias, tiled over W
    m_dn   : (BH, 1) bool     rows receiving a contribution from the row above
    m_up   : (BH, 1) bool     rows receiving a contribution from the row below
    returns (BH, W*Co) f32
    """
    # Single MXU matmul for all three dy taps (K = W*Ci, N = 3*W*Co, f32 acc).
    t = jnp.dot(x, wb_ref[...], preferred_element_type=jnp.float32)
    t_dn = t[:, :Lco]            # dy = 0: input row h contributes to output row h+1
    t_c = t[:, Lco:2 * Lco]      # dy = 1: same-row contribution
    t_up = t[:, 2 * Lco:]        # dy = 2: input row h contributes to output row h-1
    # Row halo applied to the f32 partial sums: roll (XLU) + mask (VPU).
    acc = t_c
    acc = acc + jnp.where(m_dn, pltpu.roll(t_dn, shift=1, axis=0), 0.0)
    acc = acc + jnp.where(m_up, pltpu.roll(t_up, shift=BH - 1, axis=0), 0.0)
    # Folded-BN bias + ReLU epilogue in f32.
    return jnp.maximum(acc + b_ref[...], 0.0)


def _double_conv_kernel(x_ref, wb1_ref, b1_ref, wb2_ref, b2_ref, o_ref,
                        *, B, H, W, Cmid, Cout):
    """B images per grid step.

    x_ref  : (B, H, W*Cin)       activations, lane-dense fused layout (matmul dtype)
    wb1_ref: (W*Cin,  3*W*Cmid)  fused band weights, conv #1 (BN1 scale folded in)
    b1_ref : (1, W*Cmid)         folded BN1 bias (tiled over W)
    wb2_ref: (W*Cmid, 3*W*Cout)  fused band weights, conv #2 (BN2 scale folded in)
    b2_ref : (1, W*Cout)         folded BN2 bias (tiled over W)
    o_ref  : (B, H, W*Cout)      lane-dense f32 output block
    """
    BH = B * H
    # Hoisted once and reused by both layers (JAX does not CSE broadcasts).
    r = lax.broadcasted_iota(jnp.int32, (BH, 1), 0) % H
    m_dn = r >= 1
    m_up = r <= H - 2

    x = x_ref[...].reshape(BH, x_ref.shape[-1])           # stays bf16, no upcast
    y1 = _conv_bn_relu(x, wb1_ref, b1_ref, m_dn, m_up, BH=BH, Lco=W * Cmid)
    y1 = y1.astype(wb2_ref.dtype)                         # single downcast for conv #2
    y2 = _conv_bn_relu(y1, wb2_ref, b2_ref, m_dn, m_up, BH=BH, Lco=W * Cout)
    o_ref[...] = y2.reshape(B, H, W * Cout).astype(o_ref.dtype)   # full-lane store


# --------------------------------------------------------------------------- #
# Wrapper helpers
# --------------------------------------------------------------------------- #
def _fold_bn(gamma, beta, mean, var, eps=1e-5):
    scale = gamma / jnp.sqrt(var + eps)
    bias = beta - mean * scale
    return scale, bias


def _band_matrix(w_hwio, scale, W):
    """Fused per-dy block-banded matrix for a 3x3 SAME conv in (W*C) lane layout.

    w_hwio: (3, 3, Ci, Co) f32, scale: (Co,) f32 (folded BN scale).
    Returns (W*Ci, 3*W*Co); columns [dy*W*Co : (dy+1)*W*Co] hold
      band[wp*Ci + ci, wo*Co + co] = (w * scale)[dy, wp - wo + 1, ci, co]
    for wp - wo + 1 in {0,1,2}, else 0 (this also encodes the width zero-padding).
    """
    _, _, Ci, Co = w_hwio.shape
    w = w_hwio * scale[None, None, None, :]               # fold BN scale into weights
    wo = jnp.arange(W)[None, :]                           # (1, W) output column index
    wp = jnp.arange(W)[:, None]                           # (W, 1) input  column index
    off = wp - wo + 1                                     # dx tap index, valid in [0, 2]
    valid = (off >= 0) & (off <= 2)
    sel = jnp.clip(off, 0, 2)
    bands = []
    for dy in range(3):
        b4 = w[dy][sel]                                   # (wp, wo, Ci, Co)
        b4 = jnp.where(valid[:, :, None, None], b4, 0.0)
        b4 = jnp.transpose(b4, (0, 2, 1, 3))              # (wp, Ci, wo, Co)
        bands.append(b4.reshape(W * Ci, W * Co))
    return jnp.concatenate(bands, axis=1)                 # (W*Ci, 3*W*Co)


def _largest_divisor_at_most(n, cap):
    cap = max(1, min(n, cap))
    for b in range(cap, 0, -1):
        if n % b == 0:
            return b
    return 1


def _pick_images_per_block(n, h, compute_dtype):
    # Keep the fused M dimension (B*H rows) inside the vreg budget: ~128 rows for
    # bf16 activations, ~64 for f32, so x and the f32 partial sums don't spill.
    rows_cap = max(h, 256 // jnp.dtype(compute_dtype).itemsize)
    return _largest_divisor_at_most(n, max(1, rows_cap // h))


def _derive_vmem_limit(B, H, W, Cin, Cmid, Cout, compute_dtype):
    isz = jnp.dtype(compute_dtype).itemsize
    x_blk = 2 * B * H * W * Cin * isz                       # input block, double-buffered
    o_blk = 2 * B * H * W * Cout * 4                        # f32 output block, double-buffered
    w_blk = (W * Cin * 3 * W * Cmid + W * Cmid * 3 * W * Cout) * isz  # single-buffered bands
    b_blk = (W * Cmid + W * Cout) * 4
    live = 6 * B * H * W * max(Cmid, Cout) * 4              # headroom for in-flight f32 partials
    need = x_blk + o_blk + w_blk + b_blk + live + (2 << 20)
    # Floor at the previously validated 32 MiB; cap at v7x's 64 MiB physical VMEM
    # (beyond that, width tiling is required -- see TODO at top).
    return int(min(max(need, 32 << 20), 64 << 20))


# --------------------------------------------------------------------------- #
# Wrapper
# --------------------------------------------------------------------------- #
def double_conv(x_nchw, w1_oihw, bn1, w2_oihw, bn2,
                *, compute_dtype=jnp.bfloat16):
    """Pallas implementation of DoubleConv.forward (eval-mode BN).

    x_nchw  : (N, Cin, H, W) float32
    w1_oihw : (Cmid, Cin, 3, 3), w2_oihw: (Cout, Cmid, 3, 3)
    bn1/bn2 : dicts with gamma, beta, mean, var
    compute_dtype: dtype fed to the MXU (bf16 by default; accumulation stays f32).
                   Note: the input is quantized to compute_dtype before conv #1.
    returns : (N, Cout, H, W) float32
    """
    N, Cin, H, W = x_nchw.shape
    Cmid = w1_oihw.shape[0]
    Cout = w2_oihw.shape[0]

    s1, b1 = _fold_bn(**bn1)
    s2, b2 = _fold_bn(**bn2)

    # OIHW -> HWIO, fold BN scale, build fused band matrices, cast to MXU dtype.
    w1 = jnp.transpose(w1_oihw, (2, 3, 1, 0)).astype(jnp.float32)
    w2 = jnp.transpose(w2_oihw, (2, 3, 1, 0)).astype(jnp.float32)
    wb1 = _band_matrix(w1, s1, W).astype(compute_dtype)   # (W*Cin,  3*W*Cmid)
    wb2 = _band_matrix(w2, s2, W).astype(compute_dtype)   # (W*Cmid, 3*W*Cout)
    b1t = jnp.tile(b1, W).reshape(1, W * Cmid).astype(jnp.float32)
    b2t = jnp.tile(b2, W).reshape(1, W * Cout).astype(jnp.float32)

    # NCHW -> NHWC, fuse W and C into the lane dimension (free reshape), cast to
    # the matmul dtype to halve HBM traffic.  No jnp.pad: the halo lives in-kernel.
    x = jnp.transpose(x_nchw, (0, 2, 3, 1)).reshape(N, H, W * Cin)
    x = x.astype(compute_dtype)

    B = _pick_images_per_block(N, H, compute_dtype)
    vmem_limit = _derive_vmem_limit(B, H, W, Cin, Cmid, Cout, compute_dtype)

    kernel = functools.partial(_double_conv_kernel,
                               B=B, H=H, W=W, Cmid=Cmid, Cout=Cout)

    out = pl.pallas_call(
        kernel,
        out_shape=jax.ShapeDtypeStruct((N, H, W * Cout), jnp.float32),
        grid_spec=pltpu.PrefetchScalarGridSpec(
            num_scalar_prefetch=0,
            grid=(N // B,),
            in_specs=[
                pl.BlockSpec((B, H, W * Cin), lambda n: (n, 0, 0)),
                # Grid-invariant operands: single-buffered (no 2x VMEM for weights).
                pl.BlockSpec((W * Cin, 3 * W * Cmid), lambda n: (0, 0),
                             pipeline_mode=pl.Buffered(1)),
                pl.BlockSpec((1, W * Cmid), lambda n: (0, 0),
                             pipeline_mode=pl.Buffered(1)),
                pl.BlockSpec((W * Cmid, 3 * W * Cout), lambda n: (0, 0),
                             pipeline_mode=pl.Buffered(1)),
                pl.BlockSpec((1, W * Cout), lambda n: (0, 0),
                             pipeline_mode=pl.Buffered(1)),
            ],
            out_specs=pl.BlockSpec((B, H, W * Cout), lambda n: (n, 0, 0)),
        ),
        compiler_params=pltpu.CompilerParams(
            dimension_semantics=("parallel",),
            vmem_limit_bytes=vmem_limit,
        ),
    )(x, wb1, b1t, wb2, b2t)

    # (N, H, W*Cout) -> NCHW to match the PyTorch module's output convention.
    out = out.reshape(N, H, W, Cout)
    return jnp.transpose(out, (0, 3, 1, 2))


# --------------------------------------------------------------------------- #
# Pure-JAX reference (f32) for correctness checking
# --------------------------------------------------------------------------- #
def _reference(x_nchw, w1_oihw, bn1, w2_oihw, bn2):
    def block(x_nhwc, w_oihw, bn):
        s, b = _fold_bn(**bn)
        w = jnp.transpose(w_oihw, (2, 3, 1, 0)).astype(jnp.float32)
        y = lax.conv_general_dilated(
            x_nhwc, w, window_strides=(1, 1), padding="SAME",
            dimension_numbers=("NHWC", "HWIO", "NHWC"))
        return jnp.maximum(y * s.reshape(1, 1, 1, -1) + b.reshape(1, 1, 1, -1),
                           0.0)

    x = jnp.transpose(x_nchw, (0, 2, 3, 1)).astype(jnp.float32)
    y = block(block(x, w1_oihw, bn1), w2_oihw, bn2)
    return jnp.transpose(y, (0, 3, 1, 2))


if __name__ == "__main__":
    key = jax.random.PRNGKey(0)
    k_x, k_w1, k_w2, k_g1, k_b1, k_g2, k_b2, k_m1, k_v1, k_m2, k_v2 = \
        jax.random.split(key, 11)

    N, Cin, H, W = 2, 4, 16, 16
    Cout = 8
    Cmid = Cout  # mid_channels defaults to out_channels

    x = jax.random.normal(k_x, (N, Cin, H, W), jnp.float32)
    w1 = jax.random.normal(k_w1, (Cmid, Cin, 3, 3), jnp.float32) * 0.1
    w2 = jax.random.normal(k_w2, (Cout, Cmid, 3, 3), jnp.float32) * 0.1
    bn1 = dict(
        gamma=jax.random.normal(k_g1, (Cmid,), jnp.float32) * 0.1 + 1.0,
        beta=jax.random.normal(k_b1, (Cmid,), jnp.float32) * 0.1,
        mean=jax.random.normal(k_m1, (Cmid,), jnp.float32) * 0.1,
        var=jax.random.uniform(k_v1, (Cmid,), jnp.float32, 0.5, 1.5),
    )
    bn2 = dict(
        gamma=jax.random.normal(k_g2, (Cout,), jnp.float32) * 0.1 + 1.0,
        beta=jax.random.normal(k_b2, (Cout,), jnp.float32) * 0.1,
        mean=jax.random.normal(k_m2, (Cout,), jnp.float32) * 0.1,
        var=jax.random.uniform(k_v2, (Cout,), jnp.float32, 0.5, 1.5),
    )

    # Performance configuration: bf16 MXU inputs, f32 accumulation + epilogue.
    out = jax.block_until_ready(double_conv(x, w1, bn1, w2, bn2))
    # Algorithm validation: same kernel with f32 matmuls must match f32 reference.
    out_f32 = jax.block_until_ready(
        double_conv(x, w1, bn1, w2, bn2, compute_dtype=jnp.float32))

    ref = jax.block_until_ready(_reference(x, w1, bn1, w2, bn2))

    assert out.shape == (N, Cout, H, W)
    err_exact = float(jnp.max(jnp.abs(out_f32 - ref)))
    assert err_exact < 1e-4, f"f32 kernel mismatch vs reference: {err_exact}"
    err_bf16 = float(jnp.max(jnp.abs(out - ref)))
    assert err_bf16 < 5e-2, f"bf16 kernel mismatch vs reference: {err_bf16}"

    print("KERNEL_OK")
</pallas_src>

<mosaic_0001>
module attributes {stable_mosaic.version = 11 : i64} {
  func.func @_double_conv_kernel(%arg0: i32, %arg1: memref<2x16x64xbf16, #tpu.memory_space<vmem>>, %arg2: memref<64x384xbf16, #tpu.memory_space<vmem>>, %arg3: memref<1x128xf32, #tpu.memory_space<vmem>>, %arg4: memref<128x384xbf16, #tpu.memory_space<vmem>>, %arg5: memref<1x128xf32, #tpu.memory_space<vmem>>, %arg6: memref<2x16x128xf32, #tpu.memory_space<vmem>>) attributes {dimension_semantics = [#tpu.dimension_semantics<parallel>], iteration_bounds = array<i64: 1>, scalar_prefetch = 0 : i64, scratch_operands = 0 : i64, tpu.core_type = #tpu.core_type<tc>, window_params = [{transform_indices = @transform_0, window_bounds = array<i64: 2, 16, 64>}, {pipeline_mode = #tpu.pipeline_mode<synchronous>, transform_indices = @transform_1, window_bounds = array<i64: 64, 384>}, {pipeline_mode = #tpu.pipeline_mode<synchronous>, transform_indices = @transform_2, window_bounds = array<i64: 1, 128>}, {pipeline_mode = #tpu.pipeline_mode<synchronous>, transform_indices = @transform_3, window_bounds = array<i64: 128, 384>}, {pipeline_mode = #tpu.pipeline_mode<synchronous>, transform_indices = @transform_4, window_bounds = array<i64: 1, 128>}, {transform_indices = @transform_5, window_bounds = array<i64: 2, 16, 128>}]} {
    %0 = tpu.iota {dimensions = array<i32: 0>} : vector<32x1xi32>
    %c16_i32 = arith.constant 16 : i32
    %c0_i32 = arith.constant 0 : i32
    %1 = arith.cmpi eq, %c16_i32, %c0_i32 : i32
    %c1_i32 = arith.constant 1 : i32
    %2 = arith.select %1, %c1_i32, %c16_i32 : i32
    %3 = vector.broadcast %2 : i32 to vector<32x1xi32>
    %4 = arith.remsi %0, %3 : vector<32x1xi32>
    %c0_i32_0 = arith.constant 0 : i32
    %5 = vector.broadcast %c0_i32_0 : i32 to vector<32x1xi32>
    %6 = arith.cmpi ne, %4, %5 : vector<32x1xi32>
    %c0_i32_1 = arith.constant 0 : i32
    %7 = vector.broadcast %c0_i32_1 : i32 to vector<32x1xi32>
    %8 = arith.cmpi slt, %4, %7 : vector<32x1xi32>
    %c0_i32_2 = arith.constant 0 : i32
    %9 = arith.cmpi slt, %2, %c0_i32_2 : i32
    %10 = vector.broadcast %9 : i1 to vector<32x1xi1>
    %11 = vector.broadcast %10 : vector<32x1xi1> to vector<32x1xi1>
    %12 = arith.xori %8, %11 : vector<32x1xi1>
    %13 = arith.andi %12, %6 : vector<32x1xi1>
    %14 = vector.broadcast %2 : i32 to vector<32x1xi32>
    %15 = arith.addi %4, %14 : vector<32x1xi32>
    %16 = arith.select %13, %15, %4 : vector<32x1xi1>, vector<32x1xi32>
    %c1_i32_3 = arith.constant 1 : i32
    %17 = vector.broadcast %c1_i32_3 : i32 to vector<32x1xi32>
    %18 = arith.cmpi sge, %16, %17 : vector<32x1xi32>
    %c14_i32 = arith.constant 14 : i32
    %19 = vector.broadcast %c14_i32 : i32 to vector<32x1xi32>
    %20 = arith.cmpi sle, %16, %19 : vector<32x1xi32>
    %c0 = arith.constant 0 : index
    %c0_4 = arith.constant 0 : index
    %c0_5 = arith.constant 0 : index
    %21 = vector.load %arg1[%c0, %c0_4, %c0_5] : memref<2x16x64xbf16, #tpu.memory_space<vmem>>, vector<2x16x64xbf16>
    %22 = vector.shape_cast %21 : vector<2x16x64xbf16> to vector<32x64xbf16>
    %c0_6 = arith.constant 0 : index
    %c0_7 = arith.constant 0 : index
    %23 = vector.load %arg2[%c0_6, %c0_7] : memref<64x384xbf16, #tpu.memory_space<vmem>>, vector<64x384xbf16>
    %cst = arith.constant dense<0.000000e+00> : vector<32x384xf32>
    %24 = tpu.matmul %22, %23, %cst {dimension_numbers = #tpu.dot_dimension_numbers<[1], [0], [0], [1], [0, 0, 1, 1], [], []>} : vector<32x64xbf16>, vector<64x384xbf16>, vector<32x384xf32> -> vector<32x384xf32>
    %25 = vector.extract_strided_slice %24 {offsets = [0, 0], sizes = [32, 128], strides = [1, 1]} : vector<32x384xf32> to vector<32x128xf32>
    %26 = vector.extract_strided_slice %24 {offsets = [0, 128], sizes = [32, 128], strides = [1, 1]} : vector<32x384xf32> to vector<32x128xf32>
    %27 = vector.extract_strided_slice %24 {offsets = [0, 256], sizes = [32, 128], strides = [1, 1]} : vector<32x384xf32> to vector<32x128xf32>
    %c1_i32_8 = arith.constant 1 : i32
    %28 = tpu.dynamic_rotate %25 by %c1_i32_8 dim 0 : vector<32x128xf32>, i32 -> vector<32x128xf32>
    %cst_9 = arith.constant 0.000000e+00 : f32
    %29 = vector.shape_cast %18 : vector<32x1xi1> to vector<32x1xi1>
    %30 = vector.broadcast %29 : vector<32x1xi1> to vector<32x128xi1>
    %31 = vector.broadcast %cst_9 : f32 to vector<32x128xf32>
    %32 = arith.select %30, %28, %31 : vector<32x128xi1>, vector<32x128xf32>
    %33 = arith.addf %26, %32 : vector<32x128xf32>
    %c31_i32 = arith.constant 31 : i32
    %34 = tpu.dynamic_rotate %27 by %c31_i32 dim 0 : vector<32x128xf32>, i32 -> vector<32x128xf32>
    %cst_10 = arith.constant 0.000000e+00 : f32
    %35 = vector.shape_cast %20 : vector<32x1xi1> to vector<32x1xi1>
    %36 = vector.broadcast %35 : vector<32x1xi1> to vector<32x128xi1>
    %37 = vector.broadcast %cst_10 : f32 to vector<32x128xf32>
    %38 = arith.select %36, %34, %37 : vector<32x128xi1>, vector<32x128xf32>
    %39 = arith.addf %33, %38 : vector<32x128xf32>
    %c0_11 = arith.constant 0 : index
    %c0_12 = arith.constant 0 : index
    %40 = vector.load %arg3[%c0_11, %c0_12] : memref<1x128xf32, #tpu.memory_space<vmem>>, vector<1x128xf32>
    %41 = vector.broadcast %40 : vector<1x128xf32> to vector<32x128xf32>
    %42 = arith.addf %39, %41 : vector<32x128xf32>
    %cst_13 = arith.constant 0.000000e+00 : f32
    %43 = vector.broadcast %cst_13 : f32 to vector<32x128xf32>
    %44 = arith.maximumf %42, %43 : vector<32x128xf32>
    %45 = arith.truncf %44 : vector<32x128xf32> to vector<32x128xbf16>
    %c0_14 = arith.constant 0 : index
    %c0_15 = arith.constant 0 : index
    %46 = vector.load %arg4[%c0_14, %c0_15] : memref<128x384xbf16, #tpu.memory_space<vmem>>, vector<128x384xbf16>
    %cst_16 = arith.constant dense<0.000000e+00> : vector<32x384xf32>
    %47 = tpu.matmul %45, %46, %cst_16 {dimension_numbers = #tpu.dot_dimension_numbers<[1], [0], [0], [1], [0, 0, 1, 1], [], []>} : vector<32x128xbf16>, vector<128x384xbf16>, vector<32x384xf32> -> vector<32x384xf32>
    %48 = vector.extract_strided_slice %47 {offsets = [0, 0], sizes = [32, 128], strides = [1, 1]} : vector<32x384xf32> to vector<32x128xf32>
    %49 = vector.extract_strided_slice %47 {offsets = [0, 128], sizes = [32, 128], strides = [1, 1]} : vector<32x384xf32> to vector<32x128xf32>
    %50 = vector.extract_strided_slice %47 {offsets = [0, 256], sizes = [32, 128], strides = [1, 1]} : vector<32x384xf32> to vector<32x128xf32>
    %c1_i32_17 = arith.constant 1 : i32
    %51 = tpu.dynamic_rotate %48 by %c1_i32_17 dim 0 : vector<32x128xf32>, i32 -> vector<32x128xf32>
    %cst_18 = arith.constant 0.000000e+00 : f32
    %52 = vector.shape_cast %18 : vector<32x1xi1> to vector<32x1xi1>
    %53 = vector.broadcast %52 : vector<32x1xi1> to vector<32x128xi1>
    %54 = vector.broadcast %cst_18 : f32 to vector<32x128xf32>
    %55 = arith.select %53, %51, %54 : vector<32x128xi1>, vector<32x128xf32>
    %56 = arith.addf %49, %55 : vector<32x128xf32>
    %c31_i32_19 = arith.constant 31 : i32
    %57 = tpu.dynamic_rotate %50 by %c31_i32_19 dim 0 : vector<32x128xf32>, i32 -> vector<32x128xf32>
    %cst_20 = arith.constant 0.000000e+00 : f32
    %58 = vector.shape_cast %20 : vector<32x1xi1> to vector<32x1xi1>
    %59 = vector.broadcast %58 : vector<32x1xi1> to vector<32x128xi1>
    %60 = vector.broadcast %cst_20 : f32 to vector<32x128xf32>
    %61 = arith.select %59, %57, %60 : vector<32x128xi1>, vector<32x128xf32>
    %62 = arith.addf %56, %61 : vector<32x128xf32>
    %c0_21 = arith.constant 0 : index
    %c0_22 = arith.constant 0 : index
    %63 = vector.load %arg5[%c0_21, %c0_22] : memref<1x128xf32, #tpu.memory_space<vmem>>, vector<1x128xf32>
    %64 = vector.broadcast %63 : vector<1x128xf32> to vector<32x128xf32>
    %65 = arith.addf %62, %64 : vector<32x128xf32>
    %cst_23 = arith.constant 0.000000e+00 : f32
    %66 = vector.broadcast %cst_23 : f32 to vector<32x128xf32>
    %67 = arith.maximumf %65, %66 : vector<32x128xf32>
    %68 = vector.shape_cast %67 : vector<32x128xf32> to vector<2x16x128xf32>
    %c0_24 = arith.constant 0 : index
    %c0_25 = arith.constant 0 : index
    %c0_26 = arith.constant 0 : index
    %69 = vector.load %arg6[%c0_24, %c0_25, %c0_26] : memref<2x16x128xf32, #tpu.memory_space<vmem>>, vector<2x16x128xf32>
    tpu.vector_store %arg6[%c0_24, %c0_25, %c0_26], %68 {strides = array<i32>} : memref<2x16x128xf32, #tpu.memory_space<vmem>>, vector<2x16x128xf32>,
    return
  }
  func.func @transform_0(%arg0: i32) -> (i32, i32, i32) {
    %c0_i32 = arith.constant 0 : i32
    %c0_i32_0 = arith.constant 0 : i32
    %c0_i32_1 = arith.constant 0 : i32
    return %arg0, %c0_i32, %c0_i32_0 : i32, i32, i32
  }
  func.func @transform_1(%arg0: i32) -> (i32, i32) {
    %c0_i32 = arith.constant 0 : i32
    %c0_i32_0 = arith.constant 0 : i32
    %c0_i32_1 = arith.constant 0 : i32
    return %c0_i32, %c0_i32_0 : i32, i32
  }
  func.func @transform_2(%arg0: i32) -> (i32, i32) {
    %c0_i32 = arith.constant 0 : i32
    %c0_i32_0 = arith.constant 0 : i32
    %c0_i32_1 = arith.constant 0 : i32
    return %c0_i32, %c0_i32_0 : i32, i32
  }
  func.func @transform_3(%arg0: i32) -> (i32, i32) {
    %c0_i32 = arith.constant 0 : i32
    %c0_i32_0 = arith.constant 0 : i32
    %c0_i32_1 = arith.constant 0 : i32
    return %c0_i32, %c0_i32_0 : i32, i32
  }
  func.func @transform_4(%arg0: i32) -> (i32, i32) {
    %c0_i32 = arith.constant 0 : i32
    %c0_i32_0 = arith.constant 0 : i32
    %c0_i32_1 = arith.constant 0 : i32
    return %c0_i32, %c0_i32_0 : i32, i32
  }
  func.func @transform_5(%arg0: i32) -> (i32, i32, i32) {
    %c0_i32 = arith.constant 0 : i32
    %c0_i32_0 = arith.constant 0 : i32
    %c0_i32_1 = arith.constant 0 : i32
    return %arg0, %c0_i32, %c0_i32_0 : i32, i32, i32
  }
}

</mosaic_0001>

<bundles_post_ra>
// kernel: tpu_custom_call.1
= control target key start
LH: loop header
LB: loop body
LE: loop exit
PB: predicated region body
PF: predicated region fallthrough
CT: control target
= control target key end

     0   :  { %10 = vsyncpa [#allocation3], 0  ;;  %s1153_s0 = inlined_call_operand.hbm [shape: bf16[2,16,64], index: 0, kind: input, shape index: {}]   ;;  %s1154_s1 = inlined_call_operand.hbm [shape: bf16[64,384], index: 1, kind: input, shape index: {}]   ;;  %s1155_s2 = inlined_call_operand.vmem [shape: f32[1,128], index: 2, kind: input, shape index: {}]   ;;  %s1156_s3 = inlined_call_operand.hbm [shape: bf16[128,384], index: 3, kind: input, shape index: {}]   ;;  %s1157_s4 = inlined_call_operand.vmem [shape: f32[1,128], index: 4, kind: input, shape index: {}]   ;;  %s1158_s5 = inlined_call_operand.hbm [shape: f32[2,16,128], index: 5, kind: output, shape index: {}]  }
   0x1   :  { %11 = vsyncpa [#allocation6], 0 }
   0x2   :  { %12 = vsyncpa [#allocation4], 0  ;;  %s972_s18 = smov [#allocation5]   ;;  %s878_s22 = scalar_lea.hbm %s1154_s1, 1536 }
   0x3   :  { %s30_s19 = sshll.u32 %s972_s18, 4  ;;  %p879_p0 = scmp.ne.s32.totalorder %s1154_s1, %s878_s22  ;;  %s31_s19 = int_to_ptr.vmem [resolvable:$true] %s30_s19 }
   0x4   :  { %p882_p1 = scmp.lt.u32.totalorder %s878_s22, %s1154_s1 }
   0x6   :  { %p884_p2 = pnand %p882_p1, %p879_p0 }
   0x8   :  { %887 = shalt.err (!%p884_p2)
}
   0x9   :  { %s888_s27 = scalar_lea.vmem %s31_s19, 1536  ;;  %p893_p4 = scmp.lt.s32.totalorder %s31_s19, %s31_s19 }
   0xa   :  { %p889_p3 = scmp.ne.s32.totalorder %s31_s19, %s888_s27  ;;  %p894_p5 = scmp.lt.s32.totalorder %s888_s27, %s888_s27 }
   0xc   :  { %p895_p6 = por %p894_p5, %p893_p4 }
   0xe   :  { %p896_p7 = pnand %p895_p6, %p889_p3 }
  0x10   :  { %899 = shalt.err (!%p896_p7)
}
  0x11   :  { %s973_s28 = smov 192   ;;  %s974_s29 = smov 12  }
  0x12   :  { %36 = dma.hbm_to_vmem [thread:$0]  %s1154_s1, 1536, %s31_s19, [#allocation6], %s973_s28, %s973_s28, %s974_s29  }
  0x13   :  { %s975_s7 = smov [#allocation2]   ;;  %s900_s11 = scalar_lea.hbm %s1153_s0, 256 }
  0x14   :  { %s18_s8 = sshll.u32 %s975_s7, 4  ;;  %p901_p8 = scmp.ne.s32.totalorder %s1153_s0, %s900_s11  ;;  %s19_s8 = int_to_ptr.vmem [resolvable:$true] %s18_s8 }
  0x15   :  { %p904_p9 = scmp.lt.u32.totalorder %s900_s11, %s1153_s0 }
  0x17   :  { %p906_p10 = pnand %p904_p9, %p901_p8 }
  0x19   :  { %909 = shalt.err (!%p906_p10)
}
  0x1a   :  { %s910_s16 = scalar_lea.vmem %s19_s8, 256  ;;  %p915_p12 = scmp.lt.s32.totalorder %s19_s8, %s19_s8 }
  0x1b   :  { %p911_p11 = scmp.ne.s32.totalorder %s19_s8, %s910_s16  ;;  %p916_p13 = scmp.lt.s32.totalorder %s910_s16, %s910_s16 }
  0x1d   :  { %p917_p0 = por %p916_p13, %p915_p12 }
  0x1f   :  { %p918_p1 = pnand %p917_p0, %p911_p11 }
  0x21   :  { %921 = shalt.err (!%p918_p1)
}
  0x22   :  { %s976_s1 = smov 64   ;;  %s977_s17 = smov 4  }
  0x23   :  { %24 = dma.hbm_to_vmem [thread:$0]  %s1153_s0, 256, %s19_s8, [#allocation3], %s976_s1, %s976_s1, %s977_s17  }
  0x24   :  { %s978_s20 = smov [#allocation7]   ;;  %s922_s24 = scalar_lea.hbm %s1156_s3, 3072 }
  0x25   :  { %s44_s21 = sshll.u32 %s978_s20, 4  ;;  %p923_p2 = scmp.ne.s32.totalorder %s1156_s3, %s922_s24  ;;  %s45_s21 = int_to_ptr.vmem [resolvable:$true] %s44_s21 }
  0x26   :  { %p926_p3 = scmp.lt.u32.totalorder %s922_s24, %s1156_s3 }
  0x28   :  { %p928_p4 = pnand %p926_p3, %p923_p2 }
  0x2a   :  { %931 = shalt.err (!%p928_p4)
}
  0x2b   :  { %s932_s6 = scalar_lea.vmem %s45_s21, 3072  ;;  %p937_p6 = scmp.lt.s32.totalorder %s45_s21, %s45_s21 }
  0x2c   :  { %p933_p5 = scmp.ne.s32.totalorder %s45_s21, %s932_s6  ;;  %p938_p7 = scmp.lt.s32.totalorder %s932_s6, %s932_s6 }
  0x2e   :  { %p939_p8 = por %p938_p7, %p937_p6 }
  0x30   :  { %p940_p9 = pnand %p939_p8, %p933_p5 }
  0x32   :  { %943 = shalt.err (!%p940_p9)
}
  0x33   :  { %50 = dma.hbm_to_vmem [thread:$0]  %s1156_s3, 3072, %s45_s21, [#allocation6], %s973_s28, %s973_s28, %s974_s29  }
  0x34   :  { %966 = dma.done.wait [#allocation3], 256  }
  0x35   :  { %967 = vsyncadd [#allocation3], 4294967040 }
  0x36   :  { %968 = dma.done.wait [#allocation6], 4608  }
  0x37   :  { %969 = vsyncadd [#allocation6], 4294962688  ;;  %v979_v0 = vmov 0   ;;  %v828_v1 = vld [vmem:[#allocation5 + $0x4] ss:$12 sps:$4 sm:$0xff]   ;;  %vm218_vm0 = vcmask 523264   ;;  %v63_v39 = vlaneseq }
  0x38   :  { %257 = vmatprep.mubr.bf16.mxu0 %v979_v0  ;;  %v830_v2 = vld [vmem:[#allocation5 + $0x8] ss:$12 sps:$4 sm:$0xff]   ;;  %225 = vmatprep.subr.bf16.mxu0 %v828_v1  ;;  %v831_v3 = vld [vmem:[#allocation5] ss:$12 sps:$4 sm:$0xff]   ;;  %v835_v6 = vld [vmem:[#allocation5 + $0x18] ss:$12 sps:$4 sm:$0xff]  }
  0x39   :  { %785 = vmatprep.subr.bf16.mxu1 %v830_v2  ;;  %v832_v4 = vld [vmem:[#allocation5 + $0x1c] ss:$12 sps:$4 sm:$0xff]   ;;  %226 = vmatpush1.bf16.msra.mxu0 %v831_v3  ;;  %v834_v5 = vld [vmem:[#allocation5 + $0x20] ss:$12 sps:$4 sm:$0xff]   ;;  %v838_v8 = vld [vmem:[#allocation5 + $0x38] ss:$12 sps:$4 sm:$0xff]  }
  0x3a   :  { %786 = vmatpush3.bf16.msra.mxu1 %v830_v2  ;;  %227 = vmatprep.subr.bf16.mxu0 %v832_v4  ;;  %v836_v7 = vld [vmem:[#allocation5 + $0x34] ss:$12 sps:$4 sm:$0xff]   ;;  %v839_v9 = vld [vmem:[#allocation5 + $0x30] ss:$12 sps:$4 sm:$0xff]   ;;  %v840_v10 = vld [vmem:[#allocation5 + $0x4c] ss:$12 sps:$4 sm:$0xff]  }
  0x3b   :  { %787 = vmatprep.subr.bf16.mxu1 %v834_v5  ;;  %v842_v11 = vld [vmem:[#allocation5 + $0x50] ss:$12 sps:$4 sm:$0xff]   ;;  %v843_v13 = vld [vmem:[#allocation5 + $0x48] ss:$12 sps:$4 sm:$0xff]   ;;  %v846_v17 = vld [vmem:[#allocation7] ss:$12 sps:$4 sm:$0xff]  }
  0x3c   :  { %v844_v12 = vld [vmem:[#allocation2] sm:$0xff]   ;;  %v845_v16 = vld [vmem:[#allocation2 + $0x8] sm:$0xff]   ;;  %v853_v19 = vld [vmem:[#allocation7 + $0x20] ss:$12 sps:$4 sm:$0xff]   ;;  %v1062_v40 = vshrl.u32 %v63_v39, 7 }
  0x3d   :  { %228 = vmatpush1.bf16.msra.mxu0 %v835_v6  ;;  %v848_v14 = vld [vmem:[#allocation7 + $0x4] ss:$12 sps:$4 sm:$0xff]   ;;  %v849_v15 = vld [vmem:[#allocation7 + $0x8] ss:$12 sps:$4 sm:$0xff]   ;;  %793 = vmatprep.mubr.msk.bf16.mxu1 %vm218_vm0, %v844_v12  ;;  %v860_v24 = vld [vmem:[#allocation7 + $0x4c] ss:$12 sps:$4 sm:$0xff]  }
  0x3e   :  { %788 = vmatpush3.bf16.msra.mxu1 %v834_v5  ;;  %229 = vmatprep.subr.bf16.mxu0 %v836_v7  ;;  %v852_v18 = vld [vmem:[#allocation7 + $0x1c] ss:$12 sps:$4 sm:$0xff]   ;;  %v850_v20 = vld [vmem:[#allocation7 + $0x18] ss:$12 sps:$4 sm:$0xff]   ;;  %v856_v21 = vld [vmem:[#allocation7 + $0x34] ss:$12 sps:$4 sm:$0xff]  }
  0x3f   :  { %789 = vmatprep.subr.bf16.mxu1 %v838_v8  ;;  %v854_v22 = vld [vmem:[#allocation7 + $0x30] ss:$12 sps:$4 sm:$0xff]   ;;  %v857_v23 = vld [vmem:[#allocation7 + $0x38] ss:$12 sps:$4 sm:$0xff]   ;;  %v858_v25 = vld [vmem:[#allocation7 + $0x48] ss:$12 sps:$4 sm:$0xff]  }
  0x40   :  { %v861_v26 = vld [vmem:[#allocation7 + $0x50] ss:$12 sps:$4 sm:$0xff]   ;;  %v862_v28 = vld [vmem:[#allocation7 + $0x60] ss:$12 sps:$4 sm:$0xff]   ;;  %v865_v29 = vld [vmem:[#allocation7 + $0x68] ss:$12 sps:$4 sm:$0xff]  }
  0x41   :  { %230 = vmatpush1.bf16.msra.mxu0 %v839_v9  ;;  %v864_v27 = vld [vmem:[#allocation7 + $0x64] ss:$12 sps:$4 sm:$0xff]   ;;  %v868_v30 = vld [vmem:[#allocation7 + $0x7c] ss:$12 sps:$4 sm:$0xff]   ;;  %v869_v32 = vld [vmem:[#allocation7 + $0x80] ss:$12 sps:$4 sm:$0xff]  }
  0x42   :  { %790 = vmatpush3.bf16.msra.mxu1 %v838_v8  ;;  %231 = vmatprep.subr.bf16.mxu0 %v840_v10  ;;  %v866_v31 = vld [vmem:[#allocation7 + $0x78] ss:$12 sps:$4 sm:$0xff]   ;;  %v872_v33 = vld [vmem:[#allocation7 + $0x94] ss:$12 sps:$4 sm:$0xff]   ;;  %v870_v34 = vld [vmem:[#allocation7 + $0x90] ss:$12 sps:$4 sm:$0xff]  }
  0x43   :  { %791 = vmatprep.subr.bf16.mxu1 %v842_v11  ;;  %v873_v35 = vld [vmem:[#allocation7 + $0x98] ss:$12 sps:$4 sm:$0xff]   ;;  %v874_v37 = vld [vmem:[#allocation7 + $0xa8] ss:$12 sps:$4 sm:$0xff]   ;;  %v877_v38 = vld [vmem:[#allocation7 + $0xb0] ss:$12 sps:$4 sm:$0xff]  }
  0x44   :  { %v876_v36 = vld [vmem:[#allocation7 + $0xac] ss:$12 sps:$4 sm:$0xff]   ;;  %v65_v41 = vadd.s32 8, %v1062_v40  ;;  %v66_v47 = vadd.s32 16, %v1062_v40  ;;  %vm331_vm1 = vcmp.lt.s32.totalorder %v1062_v40, 1  ;;  %vm356_vm2 = vcmp.lt.s32.totalorder %v1062_v40, 7 }
  0x45   :  { %232 = vmatpush1.bf16.msra.mxu0 %v843_v13  ;;  %v67_v59 = vadd.s32 24, %v1062_v40  ;;  %v72_v5 = vand.u32 15, %v1062_v40 }
  0x46   :  { %792 = vmatpush3.bf16.msra.mxu1 %v842_v11  ;;  %554 = vmatprep.subr.bf16.mxu0 %v848_v14  ;;  %v79_v44 = vand.u32 15, %v65_v41  ;;  %v86_v61 = vand.u32 15, %v66_v47 }
  0x47   :  { %797 = vmatprep.subr.bf16.mxu1 %v849_v15  ;;  %v93_v8 = vand.u32 15, %v67_v59  ;;  %vm1092_vm5 = vcmp.ge.s32.totalorder %v72_v5, 1 }
  0x48   :  { %739 = vmatmul.mubr.msk.bf16.vlgmr.msra.gmra.mrb[0].mxu0 %vm218_vm0, %v844_v12  ;;  %vm1068_vm3 = vcmp.le.s32.totalorder %v79_v44, 14  ;;  %vm1086_vm4 = vcmp.ge.s32.totalorder %v86_v61, 1 }
  0x49   :  { %794 = vmatmul.mubr.msk.bf16.vlgmr.msra.gmra.mrb[0].mxu1 %vm218_vm0, %v845_v16  ;;  %267 = vmatprep.mubr.bf16.mxu0 %v979_v0  ;;  %vm1098_vm6 = vcmp.le.s32.totalorder %v93_v8, 14 }
  0x4a   :  { %555 = vmatpush1.bf16.msra.mxu0 %v846_v17  ;;  %798 = vmatpush3.bf16.msra.mxu1 %v849_v15 }
  0x4b   :  { %556 = vmatprep.subr.bf16.mxu0 %v852_v18  ;;  %799 = vmatprep.subr.bf16.mxu1 %v853_v19 }
  0x4e   :  { %557 = vmatpush1.bf16.msra.mxu0 %v850_v20  ;;  %800 = vmatpush3.bf16.msra.mxu1 %v853_v19 }
  0x4f   :  { %558 = vmatprep.subr.bf16.mxu0 %v856_v21  ;;  %801 = vmatprep.subr.bf16.mxu1 %v857_v23 }
  0x50   :  { %740 = vmatmul.mubr.msk.bf16.gmra.mrb[4].mxu0 %vm218_vm0, %v845_v16 }
  0x51   :  { %586 = vmatprep.mubr.bf16.mxu0 %v979_v0 }
  0x52   :  { %559 = vmatpush1.bf16.msra.mxu0 %v854_v22  ;;  %802 = vmatpush3.bf16.msra.mxu1 %v857_v23  ;;  %v743_v22 = vld [vmem:[%s1155_s2] ss:$0 sm:$0xff] }
  0x53   :  { %560 = vmatprep.subr.bf16.mxu0 %v860_v24  ;;  %803 = vmatprep.subr.bf16.mxu1 %v861_v26 }
  0x56   :  { %561 = vmatpush1.bf16.msra.mxu0 %v858_v25  ;;  %804 = vmatpush3.bf16.msra.mxu1 %v861_v26 }
  0x57   :  { %562 = vmatprep.subr.bf16.mxu0 %v864_v27  ;;  %805 = vmatprep.subr.bf16.mxu1 %v865_v29 }
  0x5a   :  { %563 = vmatpush1.bf16.msra.mxu0 %v862_v28  ;;  %806 = vmatpush3.bf16.msra.mxu1 %v865_v29 }
  0x5b   :  { %564 = vmatprep.subr.bf16.mxu0 %v868_v30  ;;  %807 = vmatprep.subr.bf16.mxu1 %v869_v32 }
  0x5e   :  { %565 = vmatpush1.bf16.msra.mxu0 %v866_v31  ;;  %808 = vmatpush3.bf16.msra.mxu1 %v869_v32 }
  0x5f   :  { %566 = vmatprep.subr.bf16.mxu0 %v872_v33  ;;  %809 = vmatprep.subr.bf16.mxu1 %v873_v35 }
  0x62   :  { %567 = vmatpush1.bf16.msra.mxu0 %v870_v34  ;;  %810 = vmatpush3.bf16.msra.mxu1 %v873_v35 }
  0x63   :  { %568 = vmatprep.subr.bf16.mxu0 %v876_v36  ;;  %811 = vmatprep.subr.bf16.mxu1 %v877_v38 }
  0x66   :  { %569 = vmatpush1.bf16.msra.mxu0 %v874_v37  ;;  %812 = vmatpush3.bf16.msra.mxu1 %v877_v38 }
 0x11b   :  { %v259_v42 = vpop.f32.mrb[0].mxu0 }
 0x11c   :  { %v795_v43 = vpop.f32.mrb[0].mxu1  ;;  %v261_v45 = vpop.f32.mrb[1].mxu0  ;;  %v327_v52 = vrot.slane %v259_v42, 7 }
 0x11d   :  { %v312_v46 = vpop.f32.mrb[1].mxu1  ;;  %v354_v48 = vrot.slane %v795_v43, 1  ;;  %v263_v50 = vpop.f32.mrb[2].mxu0 }
 0x11e   :  { %v352_v49 = vrot.slane %v312_v46, 1  ;;  %v796_v51 = vpop.f32.mrb[2].mxu1  ;;  %v328_v53 = vrot.slane %v263_v50, 7  ;;  %v265_v55 = vpop.f32.mrb[3].mxu0 }
 0x11f   :  { %v355_v54 = vrot.slane %v796_v51, 1  ;;  %v315_v56 = vpop.f32.mrb[3].mxu1 }
 0x120   :  { %v353_v58 = vrot.slane %v315_v56, 1  ;;  %v334_v60 = vsel %vm331_vm1, %v327_v52, %v328_v53 }
 0x121   :  { %v357_v62 = vsel %vm356_vm2, %v354_v48, %v355_v54  ;;  %v360_v63 = vsel %vm356_vm2, %v355_v54, %v352_v49  ;;  %v349_v1 = vadd.f32 %v334_v60, %v265_v55 }
 0x122   :  { %v358_v2 = vsel %vm356_vm2, %v353_v58, %v354_v48  ;;  %v359_v3 = vsel %vm356_vm2, %v352_v49, %v353_v58  ;;  %v372_v27 = vsel %vm1098_vm6, %v360_v63, 0.0 }
 0x123   :  { %v370_v4 = vsel %vm1068_vm3, %v358_v2, 0.0  ;;  %v269_v7 = vpop.f32.mrb[4].mxu0 }
 0x124   :  { %v374_v6 = vadd.f32 %v370_v4, %v349_v1  ;;  %v329_v9 = vrot.slane %v269_v7, 7  ;;  %v271_v11 = vpop.f32.mrb[5].mxu0 }
 0x125   :  { %v273_v12 = vpop.f32.mrb[6].mxu0 }
 0x126   :  { %v333_v13 = vsel %vm331_vm1, %v328_v53, %v329_v9  ;;  %v330_v15 = vrot.slane %v273_v12, 7  ;;  %v275_v16 = vpop.f32.mrb[7].mxu0  ;;  %v385_v29 = vadd.f32 %v743_v22, %v374_v6 }
 0x127   :  { %v346_v17 = vsel %vm1086_vm4, %v333_v13, 0.0 }
 0x128   :  { %v350_v19 = vadd.f32 %v346_v17, %v271_v11  ;;  %v335_v20 = vsel %vm331_vm1, %v330_v15, %v327_v52  ;;  %v332_v21 = vsel %vm331_vm1, %v329_v9, %v330_v15  ;;  %v389_v36 = vmax.f32 %v385_v29, 0.0 }
 0x129   :  { %v344_v23 = vsel %vm1092_vm5, %v335_v20, 0.0  ;;  %v351_v24 = vadd.f32 %v332_v21, %v275_v16 }
 0x12a   :  { %v375_v25 = vadd.f32 %v357_v62, %v350_v19  ;;  %v348_v26 = vadd.f32 %v344_v23, %v261_v45  ;;  %v768_v62 = vld [vmem:[%s1157_s4] ss:$0 sm:$0xff]  ;;  %s980_s4 = smov [#allocation8]  }
 0x12b   :  { %v376_v28 = vadd.f32 %v372_v27, %v351_v24  ;;  %s712_s8 = sshll.u32 %s980_s4, 4  ;;  %s713_s8 = int_to_ptr.vmem [resolvable:$true] %s712_s8 }
 0x12c   :  { %v386_v30 = vadd.f32 %v743_v22, %v375_v25  ;;  %v373_v31 = vadd.f32 %v359_v3, %v348_v26  ;;  %s944_s9 = scalar_lea.vmem %s713_s8, 512  ;;  %p949_p11 = scmp.lt.s32.totalorder %s713_s8, %s713_s8 }
 0x12d   :  { %v387_v32 = vadd.f32 %v743_v22, %v376_v28  ;;  %p945_p10 = scmp.ne.s32.totalorder %s713_s8, %s944_s9  ;;  %p950_p12 = scmp.lt.s32.totalorder %s944_s9, %s944_s9 }
 0x12e   :  { %v390_v33 = vmax.f32 %v386_v30, 0.0  ;;  %v384_v34 = vadd.f32 %v743_v22, %v373_v31 }
 0x12f   :  { %v391_v35 = vmax.f32 %v387_v32, 0.0  ;;  %p951_p13 = por %p950_p12, %p949_p11 }
 0x130   :  { %v388_v37 = vmax.f32 %v384_v34, 0.0 }
 0x131   :  { %v393_v38 = vpack.c.bf16 %v391_v35, %v390_v33  ;;  %p952_p0 = pnand %p951_p13, %p945_p10 }
 0x132   :  { %v392_v39 = vpack.c.bf16 %v389_v36, %v388_v37 }
 0x134   :  { %587 = vmatmul.mubr.bf16.vlgmr.msra.gmra.mrb[8].mxu0 %v392_v39  ;;  %813 = vmatprep.mubr.bf16.mxu1 %v392_v39 }
 0x135   :  { %814 = vmatmul.mubr.bf16.vlgmr.msra.gmra.mrb[4].mxu1 %v393_v38  ;;  %596 = vmatprep.mubr.bf16.mxu0 %v979_v0 }
 0x13c   :  { %597 = vmatmul.mubr.bf16.gmra.mrb[12].mxu0 %v393_v38 }
 0x207   :  { %v588_v41 = vpop.f32.mrb[8].mxu0 }
 0x208   :  { %v590_v42 = vpop.f32.mrb[9].mxu0  ;;  %v815_v43 = vpop.f32.mrb[4].mxu1  ;;  %v656_v46 = vrot.slane %v588_v41, 7 }
 0x209   :  { %v592_v44 = vpop.f32.mrb[10].mxu0  ;;  %v641_v45 = vpop.f32.mrb[5].mxu1  ;;  %v674_v51 = vrot.slane %v815_v43, 1 }
 0x20a   :  { %v657_v47 = vrot.slane %v592_v44, 7  ;;  %v672_v48 = vrot.slane %v641_v45, 1  ;;  %v594_v49 = vpop.f32.mrb[11].mxu0  ;;  %v816_v50 = vpop.f32.mrb[6].mxu1 }
 0x20b   :  { %v675_v52 = vrot.slane %v816_v50, 1  ;;  %v644_v53 = vpop.f32.mrb[7].mxu1 }
 0x20c   :  { %v662_v54 = vsel %vm331_vm1, %v656_v46, %v657_v47  ;;  %v673_v55 = vrot.slane %v644_v53, 1 }
 0x20d   :  { %v669_v56 = vadd.f32 %v662_v54, %v594_v49  ;;  %v676_v0 = vsel %vm356_vm2, %v674_v51, %v675_v52  ;;  %v679_v58 = vsel %vm356_vm2, %v675_v52, %v672_v48 }
 0x20e   :  { %v677_v59 = vsel %vm356_vm2, %v673_v55, %v674_v51  ;;  %v678_v60 = vsel %vm356_vm2, %v672_v48, %v673_v55  ;;  %v683_v20 = vsel %vm1098_vm6, %v679_v58, 0.0 }
 0x20f   :  { %v681_v61 = vsel %vm1068_vm3, %v677_v59, 0.0  ;;  %v598_v63 = vpop.f32.mrb[12].mxu0 }
 0x210   :  { %v685_v1 = vadd.f32 %v681_v61, %v669_v56  ;;  %v658_v2 = vrot.slane %v598_v63, 7  ;;  %v600_v3 = vpop.f32.mrb[13].mxu0 }
 0x211   :  { %v602_v4 = vpop.f32.mrb[14].mxu0 }
 0x212   :  { %v696_v5 = vadd.f32 %v768_v62, %v685_v1  ;;  %v661_v6 = vsel %vm331_vm1, %v657_v47, %v658_v2  ;;  %v659_v7 = vrot.slane %v602_v4, 7  ;;  %v604_v8 = vpop.f32.mrb[15].mxu0 }
 0x213   :  { %v666_v9 = vsel %vm1086_vm4, %v661_v6, 0.0 }
 0x214   :  { %v700_v57 = vmax.f32 %v696_v5, 0.0  ;;  %v670_v11 = vadd.f32 %v666_v9, %v600_v3  ;;  %v663_v12 = vsel %vm331_vm1, %v659_v7, %v656_v46  ;;  %v660_v13 = vsel %vm331_vm1, %v658_v2, %v659_v7 }
 0x215   :  { %v664_v15 = vsel %vm1092_vm5, %v663_v12, 0.0  ;;  %v671_v16 = vadd.f32 %v660_v13, %v604_v8 }
 0x216   :  { %704 = vst [vmem:[#allocation8 + $0x8] sm:$0xff] %v700_v57  ;;  %v686_v17 = vadd.f32 %v676_v0, %v670_v11  ;;  %v668_v19 = vadd.f32 %v664_v15, %v590_v42 }
 0x217   :  { %v687_v10 = vadd.f32 %v683_v20, %v671_v16 }
 0x218   :  { %v697_v21 = vadd.f32 %v768_v62, %v686_v17  ;;  %v684_v22 = vadd.f32 %v678_v60, %v668_v19 }
 0x219   :  { %v698_v23 = vadd.f32 %v768_v62, %v687_v10 }
 0x21a   :  { %v701_v24 = vmax.f32 %v697_v21, 0.0  ;;  %v695_v25 = vadd.f32 %v768_v62, %v684_v22 }
 0x21b   :  { %v702_v40 = vmax.f32 %v698_v23, 0.0 }
 0x21c   :  { %705 = vst [vmem:[#allocation8 + $0x10] sm:$0xff] %v701_v24  ;;  %v699_v14 = vmax.f32 %v695_v25, 0.0 }
 0x21d   :  { %706 = vst [vmem:[#allocation8 + $0x18] sm:$0xff] %v702_v40 }
 0x21e   :  { %703 = vst [vmem:[#allocation8] sm:$0xff] %v699_v14 }
 0x21f   :  { %955 = shalt.err (!%p952_p0)
}
 0x220   :  { %s956_s12 = scalar_lea.hbm %s1158_s5, 512 }
 0x221   :  { %p957_p1 = scmp.ne.s32.totalorder %s1158_s5, %s956_s12  ;;  %p960_p2 = scmp.lt.u32.totalorder %s956_s12, %s1158_s5 }
 0x223   :  { %p962_p3 = pnand %p960_p2, %p957_p1 }
 0x225   :  { %965 = shalt.err (!%p962_p3)
}
 0x226   :  { %s981_s1 = smov 128   ;;  %s982_s17 = smov 8  }
 0x227   :  { %718 = dma.vmem_to_hbm [thread:$0]  %s713_s8, 512, %s1158_s5, [#allocation4], %s981_s1, %s981_s1, %s982_s17  }
 0x228   :  { %970 = dma.done.wait [#allocation4], 512  }
 0x229   :  { %971 = vsyncadd [#allocation4], 4294966784 }
 0x22a   :  { %722 = vsyncpa [#allocation3], 1 }
 0x22b   :  { %723 = vsyncpa [#allocation6], 1 }
 0x22c   :  { %724 = vsyncpa [#allocation4], 1 }

</bundles_post_ra>
